<compile_context>
chip_gen: v7x
topology: tpu7x:2x2x1
jax: 0.10.0
libtpu: 0.0.40
codegen_flags: <defaults>
</compile_context>

<pallas_src>
import functools

import jax
import jax.numpy as jnp
from jax.experimental import pallas as pl
from jax.experimental.pallas import tpu as pltpu


# Tap order t = (dy+1)*3 + (dx+1) == kh*3 + kw; must match the host-side weight repack.
_TAPS = tuple((dy, dx) for dy in (-1, 0, 1) for dx in (-1, 0, 1))

# True  -> divide on the EUP approximate-reciprocal path (perf review; ~1e-3-level err).
# False -> exact f32 reciprocal, keeps 1e-4 parity with the PyTorch/XLA reference.
_APPROX_SIGMOID_RECIP = False


def _resblock_kernel(x_ref, w_ref, b_ref, m_ref, o_ref, col_ref, *, w_img):
    """One grid step processes n_tile whole images.

    x_ref  : (n_tile, C, HW)        input (also the residual); C on sublanes,
                                    per-image flattened spatial on lanes (lane-dense).
    w_ref  : (2C, 9*c_pad)          conv weight, tap-major im2col layout; each tap's
                                    C input channels zero-padded to c_pad rows.
    b_ref  : (2C, 1)                conv bias.
    m_ref  : (9, 1, HW)             f32 border masks (1 = tap reads in-image pixel).
    o_ref  : (n_tile, C, HW)        residual output.
    col_ref: VMEM (n_tile, 9*c_pad, HW) f32 im2col scratch.
    """
    n_tile, c_in, hw = x_ref.shape
    c_out = b_ref.shape[0]                       # 2C
    c_pad = col_ref.shape[1] // 9

    # Zero the scratch so the (c_pad - C) padding rows (zero weights, but possibly
    # NaN from uninitialized VMEM) cannot poison the matmul.  Done unconditionally
    # (not pl.when(step == 0)) so it stays correct when the batch axis is split
    # across TensorCores via dimension_semantics=("parallel",).  At large n_tile,
    # zero only the pad rows instead.
    col_ref[...] = jnp.zeros_like(col_ref)

    x = x_ref[...].astype(jnp.float32)           # (n_tile, C, HW)

    # im2col: per tap one lane rotation (XLU slot) + one masked multiply (VPU),
    # stored to an 8-aligned sublane slot of the scratch.  Rolling the per-image HW
    # axis by dy*W+dx lands on the same image's shifted pixel; the host-built mask
    # zeroes out-of-image taps, reproducing Conv2d's zero padding.  Because the lane
    # axis is per-image, there is no cross-image wrap hazard.
    for t, (dy, dx) in enumerate(_TAPS):
        d = dy * w_img + dx
        xs = x if d == 0 else pltpu.roll(x, shift=(-d) % hw, axis=2)
        if not (dy == 0 and dx == 0):
            xs = xs * m_ref[t]                   # (1, HW) mask, broadcast over (n_tile, C)
        col_ref[:, t * c_pad : t * c_pad + c_in, :] = xs

    w = w_ref[...]                                                  # (2C, 9*c_pad)
    bias = jnp.broadcast_to(b_ref[...].astype(jnp.float32), (c_out, hw))  # hoisted

    # One K=9*c_pad matmul per image (vs. nine K=C dots).  f32 operands kept on
    # purpose (see header).  At much larger HW, chunk this dot over 512-lane slices
    # with lax.fori_loop(..., unroll=True) to bound vreg pressure.
    for i in range(n_tile):
        acc = jnp.dot(w, col_ref[i], preferred_element_type=jnp.float32) + bias  # (2C, HW)
        a = acc[:c_in, :]
        g = acc[c_in:, :]
        # sigmoid(g) = 1 / (1 + exp(-g)): exp on the EUP; divide via pl.reciprocal.
        sig = pl.reciprocal(1.0 + jnp.exp(-g), approx=_APPROX_SIGMOID_RECIP)
        # Residual add + store.  With C=4 this store is sublane-masked (accepted).
        o_ref[i] = (x[i] + a * sig).astype(o_ref.dtype)


def residual_block_swiglu(x_nchw, w_oihw, bias, *, n_tile=None):
    """x_nchw: (N, C, H, W); w_oihw: (2C, C, 3, 3); bias: (2C,) -> (N, C, H, W)."""
    N, C, H, W = x_nchw.shape
    assert w_oihw.shape == (2 * C, C, 3, 3)
    assert bias.shape == (2 * C,)
    HW = H * W

    if n_tile is None:
        # Largest divisor of N up to 8 keeps the unrolled per-image loop short and
        # the im2col scratch tiny.  For large N, raise toward ~1-2 MiB streamed per
        # grid step (re-derived for v7x's 64 MiB VMEM vs. 128 MiB on v5e/v6e).
        n_tile = max(d for d in range(1, min(N, 8) + 1) if N % d == 0)
    assert N % n_tile == 0

    c_pad = -(-C // 8) * 8  # per-tap channel slot rounded up to a sublane group

    # Free reshape only: NO host-side NCHW transpose of x or of the output.
    x3 = x_nchw.reshape(N, C, HW)

    # Weight repack: (2C, C, kh, kw) -> (2C, kh, kw, C) -> (2C, 9, C) -> pad C to
    # c_pad -> (2C, 9*c_pad), matching col_ref rows (k = t*c_pad + c, t = kh*3+kw).
    w_t = jnp.transpose(w_oihw, (0, 2, 3, 1)).reshape(2 * C, 9, C)
    w2 = jnp.pad(w_t, ((0, 0), (0, 0), (0, c_pad - C))).reshape(2 * C, 9 * c_pad)
    b2 = bias.reshape(2 * C, 1)

    # Border masks per tap, built once on the host (replaces in-kernel %, //, cmp).
    yy = jnp.arange(H).reshape(H, 1)
    xx = jnp.arange(W).reshape(1, W)
    masks = []
    for dy, dx in _TAPS:
        ok = ((yy + dy >= 0) & (yy + dy <= H - 1) &
              (xx + dx >= 0) & (xx + dx <= W - 1))
        masks.append(ok.reshape(1, HW))
    m = jnp.stack(masks, axis=0).astype(jnp.float32)        # (9, 1, HW)

    kernel = functools.partial(_resblock_kernel, w_img=W)

    out3 = pl.pallas_call(
        kernel,
        out_shape=jax.ShapeDtypeStruct((N, C, HW), x_nchw.dtype),
        grid=(N // n_tile,),
        in_specs=[
            pl.BlockSpec((n_tile, C, HW), lambda i: (i, 0, 0)),     # x, tiled over N
            pl.BlockSpec((2 * C, 9 * c_pad), lambda i: (0, 0)),     # weight (replicated)
            pl.BlockSpec((2 * C, 1), lambda i: (0, 0)),             # bias
            pl.BlockSpec((9, 1, HW), lambda i: (0, 0, 0)),          # border masks
        ],
        out_specs=pl.BlockSpec((n_tile, C, HW), lambda i: (i, 0, 0)),
        scratch_shapes=[pltpu.VMEM((n_tile, 9 * c_pad, HW), jnp.float32)],
        compiler_params=pltpu.CompilerParams(
            # Batch axis is independent -> "parallel" shards the grid across both
            # v7x TensorCores (no-op on single-TC v5e/v6e).
            dimension_semantics=("parallel",),
            # Explicit VMEM budget (footprint here is <1 MiB/step; 32 MiB is within
            # every generation's limit, incl. v7x's 64 MiB physical VMEM).
            vmem_limit_bytes=32 * 1024 * 1024,
        ),
    )(x3, w2, b2, m)

    return out3.reshape(N, C, H, W)


def _reference(x_nchw, w_oihw, bias):
    """Pure-JAX reference (mirrors PyTorch Conv2d(pad=1) + SwiGLU + residual)."""
    N, C, H, W = x_nchw.shape
    x = jnp.transpose(x_nchw, (0, 2, 3, 1))
    w = jnp.transpose(w_oihw, (2, 3, 1, 0))
    y = jax.lax.conv_general_dilated(
        x, w, window_strides=(1, 1), padding=((1, 1), (1, 1)),
        dimension_numbers=("NHWC", "HWIO", "NHWC"))
    y = y + bias[None, None, None, :]
    a, g = y[..., :C], y[..., C:]
    out = x + a * jax.nn.sigmoid(g)
    return jnp.transpose(out, (0, 3, 1, 2))


if __name__ == "__main__":
    # Shapes consistent with ResidualBlock(channels=4): x is (N, C, H, W).
    N, C, H, W = 2, 4, 16, 16
    key = jax.random.PRNGKey(0)
    kx, kw, kb = jax.random.split(key, 3)

    x = jax.random.normal(kx, (N, C, H, W), dtype=jnp.float32)
    # Conv2d(channels, channels*2, k=3): weight (2C, C, 3, 3), bias (2C,)
    w = jax.random.normal(kw, (2 * C, C, 3, 3), dtype=jnp.float32) * 0.1
    b = jax.random.normal(kb, (2 * C,), dtype=jnp.float32) * 0.1

    out = jax.block_until_ready(residual_block_swiglu(x, w, b))
    ref = jax.block_until_ready(_reference(x, w, b))

    assert out.shape == (N, C, H, W)
    assert jnp.allclose(out, ref, atol=1e-4, rtol=1e-4), "mismatch vs reference"
    print("KERNEL_OK")
</pallas_src>

<mosaic_0001>
module attributes {stable_mosaic.version = 11 : i64} {
  func.func @_resblock_kernel(%arg0: i32, %arg1: memref<2x4x256xf32, #tpu.memory_space<vmem>>, %arg2: memref<8x72xf32, #tpu.memory_space<vmem>>, %arg3: memref<8x1xf32, #tpu.memory_space<vmem>>, %arg4: memref<9x1x256xf32, #tpu.memory_space<vmem>>, %arg5: memref<2x4x256xf32, #tpu.memory_space<vmem>>, %arg6: memref<2x72x256xf32, #tpu.memory_space<vmem>>) attributes {dimension_semantics = [#tpu.dimension_semantics<parallel>], iteration_bounds = array<i64: 1>, scalar_prefetch = 0 : i64, scratch_operands = 1 : i64, tpu.core_type = #tpu.core_type<tc>, window_params = [{transform_indices = @transform_0, window_bounds = array<i64: 2, 4, 256>}, {pipeline_mode = #tpu.pipeline_mode<synchronous>, transform_indices = @transform_1, window_bounds = array<i64: 8, 72>}, {pipeline_mode = #tpu.pipeline_mode<synchronous>, transform_indices = @transform_2, window_bounds = array<i64: 8, 1>}, {pipeline_mode = #tpu.pipeline_mode<synchronous>, transform_indices = @transform_3, window_bounds = array<i64: 9, 1, 256>}, {transform_indices = @transform_4, window_bounds = array<i64: 2, 4, 256>}]} {
    %cst = arith.constant 0.000000e+00 : f32
    %0 = vector.broadcast %cst : f32 to vector<2x72x256xf32>
    %c0 = arith.constant 0 : index
    %c0_0 = arith.constant 0 : index
    %c0_1 = arith.constant 0 : index
    %1 = vector.load %arg6[%c0, %c0_0, %c0_1] : memref<2x72x256xf32, #tpu.memory_space<vmem>>, vector<2x72x256xf32>
    tpu.vector_store %arg6[%c0, %c0_0, %c0_1], %0 {strides = array<i32>} : memref<2x72x256xf32, #tpu.memory_space<vmem>>, vector<2x72x256xf32>,
    %c0_2 = arith.constant 0 : index
    %c0_3 = arith.constant 0 : index
    %c0_4 = arith.constant 0 : index
    %2 = vector.load %arg1[%c0_2, %c0_3, %c0_4] : memref<2x4x256xf32, #tpu.memory_space<vmem>>, vector<2x4x256xf32>
    %c17_i32 = arith.constant 17 : i32
    %3 = tpu.dynamic_rotate %2 by %c17_i32 dim 2 : vector<2x4x256xf32>, i32 -> vector<2x4x256xf32>
    %c0_5 = arith.constant 0 : index
    %c0_6 = arith.constant 0 : index
    %c0_7 = arith.constant 0 : index
    %4 = vector.load %arg4[%c0_5, %c0_6, %c0_7] : memref<9x1x256xf32, #tpu.memory_space<vmem>>, vector<1x1x256xf32>
    %5 = vector.shape_cast %4 : vector<1x1x256xf32> to vector<1x256xf32>
    %6 = vector.shape_cast %5 : vector<1x256xf32> to vector<1x1x256xf32>
    %7 = vector.broadcast %6 : vector<1x1x256xf32> to vector<2x4x256xf32>
    %8 = arith.mulf %3, %7 : vector<2x4x256xf32>
    %c0_8 = arith.constant 0 : index
    %c0_9 = arith.constant 0 : index
    %c0_10 = arith.constant 0 : index
    %9 = vector.load %arg6[%c0_8, %c0_9, %c0_10] : memref<2x72x256xf32, #tpu.memory_space<vmem>>, vector<2x4x256xf32>
    tpu.vector_store %arg6[%c0_8, %c0_9, %c0_10], %8 {strides = array<i32>} : memref<2x72x256xf32, #tpu.memory_space<vmem>>, vector<2x4x256xf32>,
    %c16_i32 = arith.constant 16 : i32
    %10 = tpu.dynamic_rotate %2 by %c16_i32 dim 2 : vector<2x4x256xf32>, i32 -> vector<2x4x256xf32>
    %c1 = arith.constant 1 : index
    %c0_11 = arith.constant 0 : index
    %c0_12 = arith.constant 0 : index
    %11 = vector.load %arg4[%c1, %c0_11, %c0_12] : memref<9x1x256xf32, #tpu.memory_space<vmem>>, vector<1x1x256xf32>
    %12 = vector.shape_cast %11 : vector<1x1x256xf32> to vector<1x256xf32>
    %13 = vector.shape_cast %12 : vector<1x256xf32> to vector<1x1x256xf32>
    %14 = vector.broadcast %13 : vector<1x1x256xf32> to vector<2x4x256xf32>
    %15 = arith.mulf %10, %14 : vector<2x4x256xf32>
    %c0_13 = arith.constant 0 : index
    %c8 = arith.constant 8 : index
    %c0_14 = arith.constant 0 : index
    %16 = vector.load %arg6[%c0_13, %c8, %c0_14] : memref<2x72x256xf32, #tpu.memory_space<vmem>>, vector<2x4x256xf32>
    tpu.vector_store %arg6[%c0_13, %c8, %c0_14], %15 {strides = array<i32>} : memref<2x72x256xf32, #tpu.memory_space<vmem>>, vector<2x4x256xf32>,
    %c15_i32 = arith.constant 15 : i32
    %17 = tpu.dynamic_rotate %2 by %c15_i32 dim 2 : vector<2x4x256xf32>, i32 -> vector<2x4x256xf32>
    %c2 = arith.constant 2 : index
    %c0_15 = arith.constant 0 : index
    %c0_16 = arith.constant 0 : index
    %18 = vector.load %arg4[%c2, %c0_15, %c0_16] : memref<9x1x256xf32, #tpu.memory_space<vmem>>, vector<1x1x256xf32>
    %19 = vector.shape_cast %18 : vector<1x1x256xf32> to vector<1x256xf32>
    %20 = vector.shape_cast %19 : vector<1x256xf32> to vector<1x1x256xf32>
    %21 = vector.broadcast %20 : vector<1x1x256xf32> to vector<2x4x256xf32>
    %22 = arith.mulf %17, %21 : vector<2x4x256xf32>
    %c0_17 = arith.constant 0 : index
    %c16 = arith.constant 16 : index
    %c0_18 = arith.constant 0 : index
    %23 = vector.load %arg6[%c0_17, %c16, %c0_18] : memref<2x72x256xf32, #tpu.memory_space<vmem>>, vector<2x4x256xf32>
    tpu.vector_store %arg6[%c0_17, %c16, %c0_18], %22 {strides = array<i32>} : memref<2x72x256xf32, #tpu.memory_space<vmem>>, vector<2x4x256xf32>,
    %c1_i32 = arith.constant 1 : i32
    %24 = tpu.dynamic_rotate %2 by %c1_i32 dim 2 : vector<2x4x256xf32>, i32 -> vector<2x4x256xf32>
    %c3 = arith.constant 3 : index
    %c0_19 = arith.constant 0 : index
    %c0_20 = arith.constant 0 : index
    %25 = vector.load %arg4[%c3, %c0_19, %c0_20] : memref<9x1x256xf32, #tpu.memory_space<vmem>>, vector<1x1x256xf32>
    %26 = vector.shape_cast %25 : vector<1x1x256xf32> to vector<1x256xf32>
    %27 = vector.shape_cast %26 : vector<1x256xf32> to vector<1x1x256xf32>
    %28 = vector.broadcast %27 : vector<1x1x256xf32> to vector<2x4x256xf32>
    %29 = arith.mulf %24, %28 : vector<2x4x256xf32>
    %c0_21 = arith.constant 0 : index
    %c24 = arith.constant 24 : index
    %c0_22 = arith.constant 0 : index
    %30 = vector.load %arg6[%c0_21, %c24, %c0_22] : memref<2x72x256xf32, #tpu.memory_space<vmem>>, vector<2x4x256xf32>
    tpu.vector_store %arg6[%c0_21, %c24, %c0_22], %29 {strides = array<i32>} : memref<2x72x256xf32, #tpu.memory_space<vmem>>, vector<2x4x256xf32>,
    %c0_23 = arith.constant 0 : index
    %c32 = arith.constant 32 : index
    %c0_24 = arith.constant 0 : index
    %31 = vector.load %arg6[%c0_23, %c32, %c0_24] : memref<2x72x256xf32, #tpu.memory_space<vmem>>, vector<2x4x256xf32>
    tpu.vector_store %arg6[%c0_23, %c32, %c0_24], %2 {strides = array<i32>} : memref<2x72x256xf32, #tpu.memory_space<vmem>>, vector<2x4x256xf32>,
    %c255_i32 = arith.constant 255 : i32
    %32 = tpu.dynamic_rotate %2 by %c255_i32 dim 2 : vector<2x4x256xf32>, i32 -> vector<2x4x256xf32>
    %c5 = arith.constant 5 : index
    %c0_25 = arith.constant 0 : index
    %c0_26 = arith.constant 0 : index
    %33 = vector.load %arg4[%c5, %c0_25, %c0_26] : memref<9x1x256xf32, #tpu.memory_space<vmem>>, vector<1x1x256xf32>
    %34 = vector.shape_cast %33 : vector<1x1x256xf32> to vector<1x256xf32>
    %35 = vector.shape_cast %34 : vector<1x256xf32> to vector<1x1x256xf32>
    %36 = vector.broadcast %35 : vector<1x1x256xf32> to vector<2x4x256xf32>
    %37 = arith.mulf %32, %36 : vector<2x4x256xf32>
    %c0_27 = arith.constant 0 : index
    %c40 = arith.constant 40 : index
    %c0_28 = arith.constant 0 : index
    %38 = vector.load %arg6[%c0_27, %c40, %c0_28] : memref<2x72x256xf32, #tpu.memory_space<vmem>>, vector<2x4x256xf32>
    tpu.vector_store %arg6[%c0_27, %c40, %c0_28], %37 {strides = array<i32>} : memref<2x72x256xf32, #tpu.memory_space<vmem>>, vector<2x4x256xf32>,
    %c241_i32 = arith.constant 241 : i32
    %39 = tpu.dynamic_rotate %2 by %c241_i32 dim 2 : vector<2x4x256xf32>, i32 -> vector<2x4x256xf32>
    %c6 = arith.constant 6 : index
    %c0_29 = arith.constant 0 : index
    %c0_30 = arith.constant 0 : index
    %40 = vector.load %arg4[%c6, %c0_29, %c0_30] : memref<9x1x256xf32, #tpu.memory_space<vmem>>, vector<1x1x256xf32>
    %41 = vector.shape_cast %40 : vector<1x1x256xf32> to vector<1x256xf32>
    %42 = vector.shape_cast %41 : vector<1x256xf32> to vector<1x1x256xf32>
    %43 = vector.broadcast %42 : vector<1x1x256xf32> to vector<2x4x256xf32>
    %44 = arith.mulf %39, %43 : vector<2x4x256xf32>
    %c0_31 = arith.constant 0 : index
    %c48 = arith.constant 48 : index
    %c0_32 = arith.constant 0 : index
    %45 = vector.load %arg6[%c0_31, %c48, %c0_32] : memref<2x72x256xf32, #tpu.memory_space<vmem>>, vector<2x4x256xf32>
    tpu.vector_store %arg6[%c0_31, %c48, %c0_32], %44 {strides = array<i32>} : memref<2x72x256xf32, #tpu.memory_space<vmem>>, vector<2x4x256xf32>,
    %c240_i32 = arith.constant 240 : i32
    %46 = tpu.dynamic_rotate %2 by %c240_i32 dim 2 : vector<2x4x256xf32>, i32 -> vector<2x4x256xf32>
    %c7 = arith.constant 7 : index
    %c0_33 = arith.constant 0 : index
    %c0_34 = arith.constant 0 : index
    %47 = vector.load %arg4[%c7, %c0_33, %c0_34] : memref<9x1x256xf32, #tpu.memory_space<vmem>>, vector<1x1x256xf32>
    %48 = vector.shape_cast %47 : vector<1x1x256xf32> to vector<1x256xf32>
    %49 = vector.shape_cast %48 : vector<1x256xf32> to vector<1x1x256xf32>
    %50 = vector.broadcast %49 : vector<1x1x256xf32> to vector<2x4x256xf32>
    %51 = arith.mulf %46, %50 : vector<2x4x256xf32>
    %c0_35 = arith.constant 0 : index
    %c56 = arith.constant 56 : index
    %c0_36 = arith.constant 0 : index
    %52 = vector.load %arg6[%c0_35, %c56, %c0_36] : memref<2x72x256xf32, #tpu.memory_space<vmem>>, vector<2x4x256xf32>
    tpu.vector_store %arg6[%c0_35, %c56, %c0_36], %51 {strides = array<i32>} : memref<2x72x256xf32, #tpu.memory_space<vmem>>, vector<2x4x256xf32>,
    %c239_i32 = arith.constant 239 : i32
    %53 = tpu.dynamic_rotate %2 by %c239_i32 dim 2 : vector<2x4x256xf32>, i32 -> vector<2x4x256xf32>
    %c8_37 = arith.constant 8 : index
    %c0_38 = arith.constant 0 : index
    %c0_39 = arith.constant 0 : index
    %54 = vector.load %arg4[%c8_37, %c0_38, %c0_39] : memref<9x1x256xf32, #tpu.memory_space<vmem>>, vector<1x1x256xf32>
    %55 = vector.shape_cast %54 : vector<1x1x256xf32> to vector<1x256xf32>
    %56 = vector.shape_cast %55 : vector<1x256xf32> to vector<1x1x256xf32>
    %57 = vector.broadcast %56 : vector<1x1x256xf32> to vector<2x4x256xf32>
    %58 = arith.mulf %53, %57 : vector<2x4x256xf32>
    %c0_40 = arith.constant 0 : index
    %c64 = arith.constant 64 : index
    %c0_41 = arith.constant 0 : index
    %59 = vector.load %arg6[%c0_40, %c64, %c0_41] : memref<2x72x256xf32, #tpu.memory_space<vmem>>, vector<2x4x256xf32>
    tpu.vector_store %arg6[%c0_40, %c64, %c0_41], %58 {strides = array<i32>} : memref<2x72x256xf32, #tpu.memory_space<vmem>>, vector<2x4x256xf32>,
    %c0_42 = arith.constant 0 : index
    %c0_43 = arith.constant 0 : index
    %60 = vector.load %arg2[%c0_42, %c0_43] : memref<8x72xf32, #tpu.memory_space<vmem>>, vector<8x72xf32>
    %c0_44 = arith.constant 0 : index
    %c0_45 = arith.constant 0 : index
    %61 = vector.load %arg3[%c0_44, %c0_45] : memref<8x1xf32, #tpu.memory_space<vmem>>, vector<8x1xf32>
    %62 = vector.shape_cast %61 : vector<8x1xf32> to vector<8x1xf32>
    %63 = vector.broadcast %62 : vector<8x1xf32> to vector<8x256xf32>
    %c0_46 = arith.constant 0 : index
    %c0_47 = arith.constant 0 : index
    %c0_48 = arith.constant 0 : index
    %64 = vector.load %arg6[%c0_46, %c0_47, %c0_48] : memref<2x72x256xf32, #tpu.memory_space<vmem>>, vector<1x72x256xf32>
    %65 = vector.shape_cast %64 : vector<1x72x256xf32> to vector<72x256xf32>
    %cst_49 = arith.constant dense<0.000000e+00> : vector<8x256xf32>
    %66 = tpu.matmul %60, %65, %cst_49 {dimension_numbers = #tpu.dot_dimension_numbers<[1], [0], [0], [1], [0, 0, 1, 1], [], []>} : vector<8x72xf32>, vector<72x256xf32>, vector<8x256xf32> -> vector<8x256xf32>
    %67 = arith.addf %66, %63 : vector<8x256xf32>
    %68 = vector.extract_strided_slice %67 {offsets = [0, 0], sizes = [4, 256], strides = [1, 1]} : vector<8x256xf32> to vector<4x256xf32>
    %69 = vector.extract_strided_slice %67 {offsets = [4, 0], sizes = [4, 256], strides = [1, 1]} : vector<8x256xf32> to vector<4x256xf32>
    %cst_50 = arith.constant 0.000000e+00 : f32
    %70 = vector.broadcast %cst_50 : f32 to vector<4x256xf32>
    %71 = arith.subf %70, %69 : vector<4x256xf32>
    %72 = math.exp %71 : vector<4x256xf32>
    %cst_51 = arith.constant 1.000000e+00 : f32
    %73 = vector.broadcast %cst_51 : f32 to vector<4x256xf32>
    %74 = arith.addf %73, %72 : vector<4x256xf32>
    %75 = tpu.reciprocal %74 : vector<4x256xf32> -> vector<4x256xf32>
    %76 = vector.extract_strided_slice %2 {offsets = [0, 0, 0], sizes = [1, 4, 256], strides = [1, 1, 1]} : vector<2x4x256xf32> to vector<1x4x256xf32>
    %77 = vector.shape_cast %76 : vector<1x4x256xf32> to vector<4x256xf32>
    %78 = arith.mulf %68, %75 : vector<4x256xf32>
    %79 = arith.addf %77, %78 : vector<4x256xf32>
    %c0_52 = arith.constant 0 : index
    %c0_53 = arith.constant 0 : index
    %c0_54 = arith.constant 0 : index
    %80 = vector.load %arg5[%c0_52, %c0_53, %c0_54] : memref<2x4x256xf32, #tpu.memory_space<vmem>>, vector<1x4x256xf32>
    %81 = vector.shape_cast %80 : vector<1x4x256xf32> to vector<4x256xf32>
    %82 = vector.shape_cast %79 : vector<4x256xf32> to vector<1x4x256xf32>
    tpu.vector_store %arg5[%c0_52, %c0_53, %c0_54], %82 {strides = array<i32>} : memref<2x4x256xf32, #tpu.memory_space<vmem>>, vector<1x4x256xf32>,
    %c1_55 = arith.constant 1 : index
    %c0_56 = arith.constant 0 : index
    %c0_57 = arith.constant 0 : index
    %83 = vector.load %arg6[%c1_55, %c0_56, %c0_57] : memref<2x72x256xf32, #tpu.memory_space<vmem>>, vector<1x72x256xf32>
    %84 = vector.shape_cast %83 : vector<1x72x256xf32> to vector<72x256xf32>
    %cst_58 = arith.constant dense<0.000000e+00> : vector<8x256xf32>
    %85 = tpu.matmul %60, %84, %cst_58 {dimension_numbers = #tpu.dot_dimension_numbers<[1], [0], [0], [1], [0, 0, 1, 1], [], []>} : vector<8x72xf32>, vector<72x256xf32>, vector<8x256xf32> -> vector<8x256xf32>
    %86 = arith.addf %85, %63 : vector<8x256xf32>
    %87 = vector.extract_strided_slice %86 {offsets = [0, 0], sizes = [4, 256], strides = [1, 1]} : vector<8x256xf32> to vector<4x256xf32>
    %88 = vector.extract_strided_slice %86 {offsets = [4, 0], sizes = [4, 256], strides = [1, 1]} : vector<8x256xf32> to vector<4x256xf32>
    %cst_59 = arith.constant 0.000000e+00 : f32
    %89 = vector.broadcast %cst_59 : f32 to vector<4x256xf32>
    %90 = arith.subf %89, %88 : vector<4x256xf32>
    %91 = math.exp %90 : vector<4x256xf32>
    %cst_60 = arith.constant 1.000000e+00 : f32
    %92 = vector.broadcast %cst_60 : f32 to vector<4x256xf32>
    %93 = arith.addf %92, %91 : vector<4x256xf32>
    %94 = tpu.reciprocal %93 : vector<4x256xf32> -> vector<4x256xf32>
    %95 = vector.extract_strided_slice %2 {offsets = [1, 0, 0], sizes = [1, 4, 256], strides = [1, 1, 1]} : vector<2x4x256xf32> to vector<1x4x256xf32>
    %96 = vector.shape_cast %95 : vector<1x4x256xf32> to vector<4x256xf32>
    %97 = arith.mulf %87, %94 : vector<4x256xf32>
    %98 = arith.addf %96, %97 : vector<4x256xf32>
    %c1_61 = arith.constant 1 : index
    %c0_62 = arith.constant 0 : index
    %c0_63 = arith.constant 0 : index
    %99 = vector.load %arg5[%c1_61, %c0_62, %c0_63] : memref<2x4x256xf32, #tpu.memory_space<vmem>>, vector<1x4x256xf32>
    %100 = vector.shape_cast %99 : vector<1x4x256xf32> to vector<4x256xf32>
    %101 = vector.shape_cast %98 : vector<4x256xf32> to vector<1x4x256xf32>
    tpu.vector_store %arg5[%c1_61, %c0_62, %c0_63], %101 {strides = array<i32>} : memref<2x4x256xf32, #tpu.memory_space<vmem>>, vector<1x4x256xf32>,
    return
  }
  func.func @transform_0(%arg0: i32) -> (i32, i32, i32) {
    %c0_i32 = arith.constant 0 : i32
    %c0_i32_0 = arith.constant 0 : i32
    %c0_i32_1 = arith.constant 0 : i32
    return %arg0, %c0_i32, %c0_i32_0 : i32, i32, i32
  }
  func.func @transform_1(%arg0: i32) -> (i32, i32) {
    %c0_i32 = arith.constant 0 : i32
    %c0_i32_0 = arith.constant 0 : i32
    %c0_i32_1 = arith.constant 0 : i32
    return %c0_i32, %c0_i32_0 : i32, i32
  }
  func.func @transform_2(%arg0: i32) -> (i32, i32) {
    %c0_i32 = arith.constant 0 : i32
    %c0_i32_0 = arith.constant 0 : i32
    %c0_i32_1 = arith.constant 0 : i32
    return %c0_i32, %c0_i32_0 : i32, i32
  }
  func.func @transform_3(%arg0: i32) -> (i32, i32, i32) {
    %c0_i32 = arith.constant 0 : i32
    %c0_i32_0 = arith.constant 0 : i32
    %c0_i32_1 = arith.constant 0 : i32
    %c0_i32_2 = arith.constant 0 : i32
    return %c0_i32, %c0_i32_0, %c0_i32_1 : i32, i32, i32
  }
  func.func @transform_4(%arg0: i32) -> (i32, i32, i32) {
    %c0_i32 = arith.constant 0 : i32
    %c0_i32_0 = arith.constant 0 : i32
    %c0_i32_1 = arith.constant 0 : i32
    return %arg0, %c0_i32, %c0_i32_0 : i32, i32, i32
  }
}

</mosaic_0001>

<bundles_post_ra>
// kernel: tpu_custom_call.1
= control target key start
LH: loop header
LB: loop body
LE: loop exit
PB: predicated region body
PF: predicated region fallthrough
CT: control target
= control target key end

     0   :  { %9 = vsyncpa [#allocation4], 0  ;;  %s936_s0 = inlined_call_operand.hbm [shape: f32[2,4,256], index: 0, kind: input, shape index: {}]   ;;  %s937_s1 = inlined_call_operand.hbm [shape: f32[8,72], index: 1, kind: input, shape index: {}]   ;;  %s938_s2 = inlined_call_operand.vmem [shape: f32[8,1], index: 2, kind: input, shape index: {}]   ;;  %s939_s3 = inlined_call_operand.vmem [shape: f32[9,1,256], index: 3, kind: input, shape index: {}]   ;;  %s940_s4 = inlined_call_operand.hbm [shape: f32[2,4,256], index: 4, kind: output, shape index: {}]  }
   0x1   :  { %10 = vsyncpa [#allocation7], 0 }
   0x2   :  { %11 = vsyncpa [#allocation5], 0  ;;  %s769_s15 = smov [#allocation3]   ;;  %s697_s19 = scalar_lea.hbm %s936_s0, 256 }
   0x3   :  { %s17_s16 = sshll.u32 %s769_s15, 4  ;;  %p698_p0 = scmp.ne.s32.totalorder %s936_s0, %s697_s19  ;;  %s18_s16 = int_to_ptr.vmem [resolvable:$true] %s17_s16 }
   0x4   :  { %p701_p1 = scmp.lt.u32.totalorder %s697_s19, %s936_s0 }
   0x6   :  { %p703_p2 = pnand %p701_p1, %p698_p0 }
   0x8   :  { %706 = shalt.err (!%p703_p2)
}
   0x9   :  { %s707_s24 = scalar_lea.vmem %s18_s16, 256  ;;  %p712_p4 = scmp.lt.s32.totalorder %s18_s16, %s18_s16 }
   0xa   :  { %p708_p3 = scmp.ne.s32.totalorder %s18_s16, %s707_s24  ;;  %p713_p5 = scmp.lt.s32.totalorder %s707_s24, %s707_s24 }
   0xc   :  { %p714_p6 = por %p713_p5, %p712_p4 }
   0xe   :  { %p715_p7 = pnand %p714_p6, %p708_p3 }
  0x10   :  { %718 = shalt.err (!%p715_p7)
}
  0x11   :  { %s770_s25 = smov 128   ;;  %s771_s26 = smov 8  }
  0x12   :  { %23 = dma.hbm_to_vmem [thread:$0]  %s936_s0, 256, %s18_s16, [#allocation4], %s770_s25, %s770_s25, %s771_s26  }
  0x13   :  { %s772_s29 = smov [#allocation6]   ;;  %s719_s7 = scalar_lea.hbm %s937_s1, 128 }
  0x14   :  { %s30_s30 = sshll.u32 %s772_s29, 4  ;;  %p720_p8 = scmp.ne.s32.totalorder %s937_s1, %s719_s7  ;;  %s31_s30 = int_to_ptr.vmem [resolvable:$true] %s30_s30 }
  0x15   :  { %p723_p9 = scmp.lt.u32.totalorder %s719_s7, %s937_s1 }
  0x17   :  { %p725_p10 = pnand %p723_p9, %p720_p8 }
  0x19   :  { %728 = shalt.err (!%p725_p10)
}
  0x1a   :  { %s729_s12 = scalar_lea.vmem %s31_s30, 128  ;;  %p734_p12 = scmp.lt.s32.totalorder %s31_s30, %s31_s30 }
  0x1b   :  { %p730_p11 = scmp.ne.s32.totalorder %s31_s30, %s729_s12  ;;  %p735_p13 = scmp.lt.s32.totalorder %s729_s12, %s729_s12 }
  0x1d   :  { %p736_p0 = por %p735_p13, %p734_p12 }
  0x1f   :  { %p737_p1 = pnand %p736_p0, %p730_p11 }
  0x21   :  { %740 = shalt.err (!%p737_p1)
}
  0x22   :  { %33 = dma.hbm_to_vmem [thread:$0]  %s937_s1, 128, %s31_s30, [#allocation7]  }
  0x23   :  { %763 = dma.done.wait [#allocation4], 256  }
  0x24   :  { %764 = vsyncadd [#allocation4], 4294967040 }
  0x25   :  { %765 = dma.done.wait [#allocation7], 128  }
  0x26   :  { %766 = vsyncadd [#allocation7], 4294967168  ;;  %v773_v0 = vmov 0.0   ;;  %v836_v1 = vld [vmem:[#allocation3 + $0x8] sm:$0xff]  ;;  %v838_v2 = vld [vmem:[#allocation3] sm:$0xff]  ;;  %s774_s1 = smov 16   ;;  %v96_v7 = vlaneseq }
  0x27   :  { %44 = vst [vmem:[#allocation2] sm:$0xff] %v773_v0  ;;  %45 = vst [vmem:[#allocation2 + $0x8] sm:$0xff] %v773_v0  ;;  %458 = vmatprep.mubr.f32.mxu0 %v773_v0  ;;  %572 = vmatprep.mubr.f32.mxu1 %v773_v0  ;;  %s775_s14 = smov 17   ;;  %v84_v3 = vcombine.high %v838_v2, %v838_v2  ;;  %v85_v4 = vcombine.high %v836_v1, %v836_v1  ;;  %s776_s15 = smov 15   ;;  %v782_v5 = vmov 0   ;;  %v366_v6 = vld [vmem:[%s938_s2] sm:$0xff] }
  0x28   :  { %46 = vst [vmem:[#allocation2 + $0x10] sm:$0xff] %v773_v0  ;;  %47 = vst [vmem:[#allocation2 + $0x18] sm:$0xff] %v773_v0  ;;  %125 = vrot.lane.b32.xlu1 %v836_v1, %s774_s1  ;;  %88 = vrot.lane.b32.xlu0 %v838_v2, %s775_s14  ;;  %s777_s16 = smov 1   ;;  %s778_s17 = smov 127   ;;  %v106_v8 = vshrl.u32 %v96_v7, 7  ;;  %v865_v9 = vand.u32 127, %v96_v7 }
  0x29   :  { %48 = vst [vmem:[#allocation2 + $0x20] sm:$0xff] %v773_v0  ;;  %49 = vst [vmem:[#allocation2 + $0x28] sm:$0xff] %v773_v0  ;;  %s779_s18 = smov 113   ;;  %s780_s19 = smov 112   ;;  %678 = vset.pattern.permute.xlu0 %v782_v5  ;;  %v103_v12 = vld [vmem:[%s939_s3] sm:$0x3] }
  0x2a   :  { %50 = vst [vmem:[#allocation2 + $0x30] sm:$0xff] %v773_v0  ;;  %51 = vst [vmem:[#allocation2 + $0x38] sm:$0xff] %v773_v0  ;;  %s781_s20 = smov 111   ;;  %v867_v10 = vsub.s32 0, %v106_v8  ;;  %v869_v11 = vsub.s32 1, %v106_v8  ;;  %vm98_vm0 = vcmp.lt.s32.totalorder %v865_v9, 17 }
  0x2b   :  { %52 = vst [vmem:[#allocation2 + $0x40] sm:$0xff] %v773_v0  ;;  %53 = vst [vmem:[#allocation2 + $0x48] sm:$0xff] %v773_v0  ;;  %v622_v23 = vld [vmem:[%s939_s3 + $0x2] sm:$0x3]  ;;  %vm131_vm1 = vcmp.lt.s32.totalorder %v865_v9, 16  ;;  %vm165_vm2 = vcmp.lt.s32.totalorder %v865_v9, 15 }
  0x2c   :  { %54 = vst [vmem:[#allocation2 + $0x50] sm:$0xff] %v773_v0  ;;  %55 = vst [vmem:[#allocation2 + $0x58] sm:$0xff] %v773_v0  ;;  %90 = vrot.lane.b32.xlu0 %v836_v1, %s775_s14  ;;  %92 = vrot.lane.b32.xlu1 %v84_v3, %s775_s14  ;;  %v108_v15 = vrot.slane %v103_v12, %v867_v10  ;;  %v112_v16 = vrot.slane %v103_v12, %v869_v11  ;;  %v623_v42 = vld [vmem:[%s939_s3 + $0x4] sm:$0x3]  ;;  %v624_v53 = vld [vmem:[%s939_s3 + $0x6] sm:$0x3] }
  0x2d   :  { %56 = vst [vmem:[#allocation2 + $0x60] sm:$0xff] %v773_v0  ;;  %57 = vst [vmem:[#allocation2 + $0x68] sm:$0xff] %v773_v0  ;;  %v142_v30 = vrot.slane %v622_v23, %v867_v10  ;;  %v146_v31 = vrot.slane %v622_v23, %v869_v11  ;;  %v176_v45 = vrot.slane %v623_v42, %v867_v10  ;;  %vm199_vm3 = vcmp.lt.s32.totalorder %v865_v9, 1 }
  0x2e   :  { %58 = vst [vmem:[#allocation2 + $0x70] sm:$0xff] %v773_v0  ;;  %59 = vst [vmem:[#allocation2 + $0x78] sm:$0xff] %v773_v0  ;;  %v180_v46 = vrot.slane %v623_v42, %v869_v11  ;;  %vm237_vm4 = vcmp.lt.s32.totalorder %v865_v9, 127  ;;  %vm271_vm5 = vcmp.lt.s32.totalorder %v865_v9, 113  ;;  %vm305_vm6 = vcmp.lt.s32.totalorder %v865_v9, 112 }
  0x2f   :  { %60 = vst [vmem:[#allocation2 + $0x80] sm:$0xff] %v773_v0  ;;  %61 = vst [vmem:[#allocation2 + $0x88] sm:$0xff] %v773_v0  ;;  %vm339_vm7 = vcmp.lt.s32.totalorder %v865_v9, 111  ;;  %vm390_vm8 = vcmask 588800  }
  0x30   :  { %62 = vst [vmem:[#allocation2 + $0x90] sm:$0xff] %v773_v0  ;;  %63 = vst [vmem:[#allocation2 + $0x98] sm:$0xff] %v773_v0  ;;  %123 = vrot.lane.b32.xlu0 %v838_v2, %s774_s1  ;;  %94 = vrot.lane.b32.xlu1 %v85_v4, %s775_s14 }
  0x31   :  { %64 = vst [vmem:[#allocation2 + $0xa0] sm:$0xff] %v773_v0  ;;  %65 = vst [vmem:[#allocation2 + $0xa8] sm:$0xff] %v773_v0 }
  0x32   :  { %66 = vst [vmem:[#allocation2 + $0xb0] sm:$0xff] %v773_v0  ;;  %67 = vst [vmem:[#allocation2 + $0xb8] sm:$0xff] %v773_v0 }
  0x33   :  { %68 = vst [vmem:[#allocation2 + $0xc0] sm:$0xff] %v773_v0  ;;  %69 = vst [vmem:[#allocation2 + $0xc8] sm:$0xff] %v773_v0 }
  0x34   :  { %70 = vst [vmem:[#allocation2 + $0xd0] sm:$0xff] %v773_v0  ;;  %71 = vst [vmem:[#allocation2 + $0xd8] sm:$0xff] %v773_v0  ;;  %127 = vrot.lane.b32.xlu0 %v84_v3, %s774_s1  ;;  %129 = vrot.lane.b32.xlu1 %v85_v4, %s774_s1 }
  0x35   :  { %72 = vst [vmem:[#allocation2 + $0xe0] sm:$0xff] %v773_v0  ;;  %73 = vst [vmem:[#allocation2 + $0xe8] sm:$0xff] %v773_v0 }
  0x36   :  { %74 = vst [vmem:[#allocation2 + $0xf0] sm:$0xff] %v773_v0  ;;  %75 = vst [vmem:[#allocation2 + $0xf8] sm:$0xff] %v773_v0 }
  0x37   :  { %76 = vst [vmem:[#allocation2 + $0x100] sm:$0xff] %v773_v0  ;;  %77 = vst [vmem:[#allocation2 + $0x108] sm:$0xff] %v773_v0 }
  0x38   :  { %78 = vst [vmem:[#allocation2 + $0x110] sm:$0xff] %v773_v0  ;;  %79 = vst [vmem:[#allocation2 + $0x118] sm:$0xff] %v773_v0  ;;  %157 = vrot.lane.b32.xlu0 %v838_v2, %s776_s15  ;;  %159 = vrot.lane.b32.xlu1 %v836_v1, %s776_s15 }
  0x39   :  { %225 = vst [vmem:[#allocation2 + $0x40] sm:$0xf] %v838_v2  ;;  %227 = vst [vmem:[#allocation2 + $0xd0] sm:$0xf] %v836_v1 }
  0x3a   :  { %226 = vst [vmem:[#allocation2 + $0x48] sm:$0xf] %v84_v3  ;;  %228 = vst [vmem:[#allocation2 + $0xd8] sm:$0xf] %v85_v4 }
  0x3c   :  { %161 = vrot.lane.b32.xlu0 %v84_v3, %s776_s15  ;;  %163 = vrot.lane.b32.xlu1 %v85_v4, %s776_s15 }
  0x40   :  { %191 = vrot.lane.b32.xlu0 %v838_v2, %s777_s16  ;;  %193 = vrot.lane.b32.xlu1 %v836_v1, %s777_s16 }
  0x44   :  { %195 = vrot.lane.b32.xlu0 %v84_v3, %s777_s16  ;;  %197 = vrot.lane.b32.xlu1 %v85_v4, %s777_s16 }
  0x48   :  { %229 = vrot.lane.b32.xlu0 %v838_v2, %s778_s17  ;;  %231 = vrot.lane.b32.xlu1 %v836_v1, %s778_s17 }
  0x4c   :  { %233 = vrot.lane.b32.xlu0 %v84_v3, %s778_s17  ;;  %235 = vrot.lane.b32.xlu1 %v85_v4, %s778_s17 }
  0x50   :  { %263 = vrot.lane.b32.xlu0 %v838_v2, %s779_s18  ;;  %265 = vrot.lane.b32.xlu1 %v836_v1, %s779_s18 }
  0x54   :  { %267 = vrot.lane.b32.xlu0 %v84_v3, %s779_s18  ;;  %269 = vrot.lane.b32.xlu1 %v85_v4, %s779_s18 }
  0x58   :  { %297 = vrot.lane.b32.xlu0 %v838_v2, %s780_s19  ;;  %299 = vrot.lane.b32.xlu1 %v836_v1, %s780_s19 }
  0x5c   :  { %301 = vrot.lane.b32.xlu0 %v84_v3, %s780_s19  ;;  %303 = vrot.lane.b32.xlu1 %v85_v4, %s780_s19 }
  0x60   :  { %331 = vrot.lane.b32.xlu0 %v838_v2, %s781_s20  ;;  %333 = vrot.lane.b32.xlu1 %v836_v1, %s781_s20 }
  0x64   :  { %335 = vrot.lane.b32.xlu0 %v84_v3, %s781_s20  ;;  %337 = vrot.lane.b32.xlu1 %v85_v4, %s781_s20 }
  0x68   :  { %369 = vperm.xlu0 %678, %v366_v6  }
  0x9a   :  { %v126_v13 = vpop.permute.xlu1 %125  ;;  %v89_v14 = vpop.permute.xlu0 %88 }
  0x9e   :  { %v91_v17 = vpop.permute.xlu0 %90  ;;  %v93_v18 = vpop.permute.xlu1 %92 }
  0x9f   :  { %v99_v19 = vsel %vm98_vm0, %v89_v14, %v93_v18  ;;  %v101_v20 = vsel %vm98_vm0, %v93_v18, %v89_v14  ;;  %v214_v14 = vrot.slane %v624_v53, %v869_v11 }
  0xa0   :  { %v115_v21 = vmul.f32 %v108_v15, %v101_v20  ;;  %v116_v22 = vmul.f32 %v112_v16, %v99_v19 }
  0xa2   :  { %119 = vst [vmem:[#allocation2] sm:$0xf] %v115_v21  ;;  %120 = vst [vmem:[#allocation2 + $0x8] sm:$0xf] %v116_v22  ;;  %v124_v24 = vpop.permute.xlu0 %123  ;;  %v95_v25 = vpop.permute.xlu1 %94 }
  0xa3   :  { %v100_v26 = vsel %vm98_vm0, %v91_v17, %v95_v25  ;;  %v102_v27 = vsel %vm98_vm0, %v95_v25, %v91_v17  ;;  %v625_v25 = vld [vmem:[%s939_s3 + $0xa] sm:$0x3] }
  0xa4   :  { %v117_v28 = vmul.f32 %v108_v15, %v102_v27  ;;  %v118_v29 = vmul.f32 %v112_v16, %v100_v26 }
  0xa6   :  { %121 = vst [vmem:[#allocation2 + $0x90] sm:$0xf] %v117_v28  ;;  %122 = vst [vmem:[#allocation2 + $0x98] sm:$0xf] %v118_v29  ;;  %v128_v32 = vpop.permute.xlu0 %127  ;;  %v130_v33 = vpop.permute.xlu1 %129  ;;  %v248_v28 = vrot.slane %v625_v25, %v867_v10  ;;  %v252_v29 = vrot.slane %v625_v25, %v869_v11 }
  0xa7   :  { %v132_v34 = vsel %vm131_vm1, %v124_v24, %v128_v32  ;;  %v134_v35 = vsel %vm131_vm1, %v128_v32, %v124_v24  ;;  %v133_v36 = vsel %vm131_vm1, %v126_v13, %v130_v33  ;;  %v135_v37 = vsel %vm131_vm1, %v130_v33, %v126_v13 }
  0xa8   :  { %v149_v38 = vmul.f32 %v142_v30, %v134_v35  ;;  %v150_v39 = vmul.f32 %v146_v31, %v132_v34  ;;  %v151_v40 = vmul.f32 %v142_v30, %v135_v37  ;;  %v152_v41 = vmul.f32 %v146_v31, %v133_v36  ;;  %v626_v36 = vld [vmem:[%s939_s3 + $0xc] sm:$0x3] }
  0xa9   :  { %v373_v58 = vld [vmem:[#allocation2 + $0x8] sm:$0xff]  ;;  %v372_v60 = vld [vmem:[#allocation2] sm:$0xff]  ;;  %v210_v13 = vrot.slane %v624_v53, %v867_v10 }
  0xaa   :  { %153 = vst [vmem:[#allocation2 + $0x10] sm:$0xf] %v149_v38  ;;  %154 = vst [vmem:[#allocation2 + $0x18] sm:$0xf] %v150_v39  ;;  %v158_v43 = vpop.permute.xlu0 %157  ;;  %v160_v44 = vpop.permute.xlu1 %159 }
  0xab   :  { %155 = vst [vmem:[#allocation2 + $0xa0] sm:$0xf] %v151_v40  ;;  %156 = vst [vmem:[#allocation2 + $0xa8] sm:$0xf] %v152_v41 }
  0xad   :  { %v491_v59 = vld [vmem:[#allocation2 + $0x98] sm:$0xff]  ;;  %v490_v7 = vld [vmem:[#allocation2 + $0x90] sm:$0xff] }
  0xae   :  { %v162_v47 = vpop.permute.xlu0 %161  ;;  %v164_v48 = vpop.permute.xlu1 %163 }
  0xaf   :  { %v166_v49 = vsel %vm165_vm2, %v158_v43, %v162_v47  ;;  %v168_v50 = vsel %vm165_vm2, %v162_v47, %v158_v43  ;;  %v167_v51 = vsel %vm165_vm2, %v160_v44, %v164_v48  ;;  %v169_v52 = vsel %vm165_vm2, %v164_v48, %v160_v44 }
  0xb0   :  { %v183_v54 = vmul.f32 %v176_v45, %v168_v50  ;;  %v184_v55 = vmul.f32 %v180_v46, %v166_v49  ;;  %v185_v56 = vmul.f32 %v176_v45, %v169_v52  ;;  %v186_v57 = vmul.f32 %v180_v46, %v167_v51 }
  0xb1   :  { %v375_v61 = vld [vmem:[#allocation2 + $0x18] sm:$0xff]  ;;  %v374_v63 = vld [vmem:[#allocation2 + $0x10] sm:$0xff] }
  0xb2   :  { %v493_v62 = vld [vmem:[#allocation2 + $0xa8] sm:$0xff]  ;;  %187 = vst [vmem:[#allocation2 + $0x20] sm:$0xf] %v183_v54  ;;  %188 = vst [vmem:[#allocation2 + $0x28] sm:$0xf] %v184_v55  ;;  %v192_v0 = vpop.permute.xlu0 %191  ;;  %v194_v3 = vpop.permute.xlu1 %193  ;;  %v631_v4 = vpack.c.bf16 %v375_v61, %v373_v58  ;;  %v633_v6 = vpack.c.bf16 %v374_v63, %v372_v60  ;;  %v492_v8 = vld [vmem:[#allocation2 + $0xa0] sm:$0xff]  ;;  %v282_v55 = vrot.slane %v626_v36, %v867_v10 }
  0xb3   :  { %189 = vst [vmem:[#allocation2 + $0xb0] sm:$0xf] %v185_v56  ;;  %190 = vst [vmem:[#allocation2 + $0xb8] sm:$0xf] %v186_v57  ;;  %v647_v5 = vpack.c.bf16 %v493_v62, %v491_v59  ;;  %v649_v12 = vpack.c.bf16 %v492_v8, %v490_v7  ;;  %v286_v56 = vrot.slane %v626_v36, %v869_v11  ;;  %v381_v63 = vld [vmem:[#allocation2 + $0x48] sm:$0xff]  ;;  %v498_v8 = vld [vmem:[#allocation2 + $0xd0] sm:$0xff] }
  0xb4   :  { %632 = vmatprep.subr.bf16.mxu0 %v631_v4 }
  0xb5   :  { %648 = vmatprep.subr.bf16.mxu1 %v647_v5  ;;  %634 = vmatpush1.bf16.msra.mxu0 %v633_v6 }
  0xb6   :  { %650 = vmatpush1.bf16.msra.mxu1 %v649_v12  ;;  %v196_v15 = vpop.permute.xlu0 %195  ;;  %v198_v16 = vpop.permute.xlu1 %197  ;;  %v627_v12 = vld [vmem:[%s939_s3 + $0xe] sm:$0x3] }
  0xb7   :  { %v200_v17 = vsel %vm199_vm3, %v192_v0, %v196_v15  ;;  %v202_v18 = vsel %vm199_vm3, %v196_v15, %v192_v0  ;;  %v201_v19 = vsel %vm199_vm3, %v194_v3, %v198_v16  ;;  %v203_v20 = vsel %vm199_vm3, %v198_v16, %v194_v3  ;;  %v499_v0 = vld [vmem:[#allocation2 + $0xd8] sm:$0xff]  ;;  %v380_v3 = vld [vmem:[#allocation2 + $0x40] sm:$0xff] }
  0xb8   :  { %v217_v21 = vmul.f32 %v210_v13, %v202_v18  ;;  %v218_v22 = vmul.f32 %v214_v14, %v200_v17  ;;  %v219_v23 = vmul.f32 %v210_v13, %v203_v20  ;;  %v220_v24 = vmul.f32 %v214_v14, %v201_v19 }
  0xb9   :  { %v377_v41 = vld [vmem:[#allocation2 + $0x28] sm:$0xff]  ;;  %v376_v43 = vld [vmem:[#allocation2 + $0x20] sm:$0xff] }
  0xba   :  { %221 = vst [vmem:[#allocation2 + $0x30] sm:$0xf] %v217_v21  ;;  %222 = vst [vmem:[#allocation2 + $0x38] sm:$0xf] %v218_v22  ;;  %v230_v26 = vpop.permute.xlu0 %229  ;;  %v232_v27 = vpop.permute.xlu1 %231  ;;  %v495_v42 = vld [vmem:[#allocation2 + $0xb8] sm:$0xff]  ;;  %v494_v52 = vld [vmem:[#allocation2 + $0xb0] sm:$0xff] }
  0xbb   :  { %223 = vst [vmem:[#allocation2 + $0xc0] sm:$0xf] %v219_v23  ;;  %224 = vst [vmem:[#allocation2 + $0xc8] sm:$0xf] %v220_v24  ;;  %v316_v23 = vrot.slane %v627_v12, %v867_v10  ;;  %v320_v24 = vrot.slane %v627_v12, %v869_v11 }
  0xbe   :  { %v234_v30 = vpop.permute.xlu0 %233  ;;  %v236_v31 = vpop.permute.xlu1 %235 }
  0xbf   :  { %v238_v32 = vsel %vm237_vm4, %v230_v26, %v234_v30  ;;  %v240_v33 = vsel %vm237_vm4, %v234_v30, %v230_v26  ;;  %v239_v34 = vsel %vm237_vm4, %v232_v27, %v236_v31  ;;  %v241_v35 = vsel %vm237_vm4, %v236_v31, %v232_v27 }
  0xc0   :  { %v255_v37 = vmul.f32 %v248_v28, %v238_v32  ;;  %v256_v38 = vmul.f32 %v252_v29, %v240_v33  ;;  %v257_v39 = vmul.f32 %v248_v28, %v239_v34  ;;  %v258_v40 = vmul.f32 %v252_v29, %v241_v35  ;;  %v628_v35 = vld [vmem:[%s939_s3 + $0x10] sm:$0x3]  ;;  %s783_s3 = smov [#allocation8]  }
  0xc1   :  { %v379_v44 = vld [vmem:[#allocation2 + $0x38] sm:$0xff]  ;;  %v378_v46 = vld [vmem:[#allocation2 + $0x30] sm:$0xff]  ;;  %s609_s13 = sshll.u32 %s783_s3, 4  ;;  %s610_s13 = int_to_ptr.vmem [resolvable:$true] %s609_s13 }
  0xc2   :  { %v497_v45 = vld [vmem:[#allocation2 + $0xc8] sm:$0xff]  ;;  %259 = vst [vmem:[#allocation2 + $0x50] sm:$0xf] %v255_v37  ;;  %260 = vst [vmem:[#allocation2 + $0x58] sm:$0xf] %v256_v38  ;;  %v264_v47 = vpop.permute.xlu0 %263  ;;  %v266_v48 = vpop.permute.xlu1 %265  ;;  %v635_v49 = vpack.c.bf16 %v379_v44, %v377_v41  ;;  %v637_v51 = vpack.c.bf16 %v378_v46, %v376_v43  ;;  %v496_v53 = vld [vmem:[#allocation2 + $0xc0] sm:$0xff]  ;;  %v350_v38 = vrot.slane %v628_v35, %v867_v10  ;;  %p746_p3 = scmp.lt.s32.totalorder %s610_s13, %s610_s13 }
  0xc3   :  { %261 = vst [vmem:[#allocation2 + $0xe0] sm:$0xf] %v257_v39  ;;  %262 = vst [vmem:[#allocation2 + $0xe8] sm:$0xf] %v258_v40  ;;  %v651_v50 = vpack.c.bf16 %v497_v45, %v495_v42  ;;  %v653_v54 = vpack.c.bf16 %v496_v53, %v494_v52  ;;  %v354_v39 = vrot.slane %v628_v35, %v869_v11  ;;  %s741_s1 = scalar_lea.vmem %s610_s13, 256 }
  0xc4   :  { %636 = vmatprep.subr.bf16.mxu0 %v635_v49  ;;  %p742_p2 = scmp.ne.s32.totalorder %s610_s13, %s741_s1  ;;  %p747_p4 = scmp.lt.s32.totalorder %s741_s1, %s741_s1 }
  0xc5   :  { %652 = vmatprep.subr.bf16.mxu1 %v651_v50  ;;  %638 = vmatpush1.bf16.msra.mxu0 %v637_v51 }
  0xc6   :  { %654 = vmatpush1.bf16.msra.mxu1 %v653_v54  ;;  %v268_v57 = vpop.permute.xlu0 %267  ;;  %v270_v58 = vpop.permute.xlu1 %269  ;;  %p748_p5 = por %p747_p4, %p746_p3 }
  0xc7   :  { %v272_v59 = vsel %vm271_vm5, %v264_v47, %v268_v57  ;;  %v274_v60 = vsel %vm271_vm5, %v268_v57, %v264_v47  ;;  %v273_v61 = vsel %vm271_vm5, %v266_v48, %v270_v58  ;;  %v275_v62 = vsel %vm271_vm5, %v270_v58, %v266_v48 }
  0xc8   :  { %v289_v4 = vmul.f32 %v282_v55, %v272_v59  ;;  %v290_v5 = vmul.f32 %v286_v56, %v274_v60  ;;  %v291_v6 = vmul.f32 %v282_v55, %v273_v61  ;;  %v292_v7 = vmul.f32 %v286_v56, %v275_v62  ;;  %v365_v59 = vld [vmem:[#allocation6] sm:$0xff]  ;;  %p749_p6 = pnand %p748_p5, %p742_p2 }
  0xc9   :  { %v383_v13 = vld [vmem:[#allocation2 + $0x58] sm:$0xff]  ;;  %v382_v15 = vld [vmem:[#allocation2 + $0x50] sm:$0xff] }
  0xca   :  { %v501_v14 = vld [vmem:[#allocation2 + $0xe8] sm:$0xff]  ;;  %293 = vst [vmem:[#allocation2 + $0x60] sm:$0xf] %v289_v4  ;;  %294 = vst [vmem:[#allocation2 + $0x68] sm:$0xf] %v290_v5  ;;  %v298_v16 = vpop.permute.xlu0 %297  ;;  %v300_v17 = vpop.permute.xlu1 %299  ;;  %v639_v18 = vpack.c.bf16 %v383_v13, %v381_v63  ;;  %v641_v20 = vpack.c.bf16 %v382_v15, %v380_v3  ;;  %v500_v21 = vld [vmem:[#allocation2 + $0xe0] sm:$0xff] }
  0xcb   :  { %295 = vst [vmem:[#allocation2 + $0xf0] sm:$0xf] %v291_v6  ;;  %296 = vst [vmem:[#allocation2 + $0xf8] sm:$0xf] %v292_v7  ;;  %v655_v19 = vpack.c.bf16 %v501_v14, %v499_v0  ;;  %v657_v22 = vpack.c.bf16 %v500_v21, %v498_v8 }
  0xcc   :  { %640 = vmatprep.subr.bf16.mxu0 %v639_v18 }
  0xcd   :  { %656 = vmatprep.subr.bf16.mxu1 %v655_v19  ;;  %642 = vmatpush1.bf16.msra.mxu0 %v641_v20 }
  0xce   :  { %658 = vmatpush1.bf16.msra.mxu1 %v657_v22  ;;  %v302_v25 = vpop.permute.xlu0 %301  ;;  %v304_v26 = vpop.permute.xlu1 %303 }
  0xcf   :  { %v306_v27 = vsel %vm305_vm6, %v298_v16, %v302_v25  ;;  %v308_v28 = vsel %vm305_vm6, %v302_v25, %v298_v16  ;;  %v307_v29 = vsel %vm305_vm6, %v300_v17, %v304_v26  ;;  %v309_v30 = vsel %vm305_vm6, %v304_v26, %v300_v17 }
  0xd0   :  { %v323_v31 = vmul.f32 %v316_v23, %v306_v27  ;;  %v324_v32 = vmul.f32 %v320_v24, %v308_v28  ;;  %v325_v33 = vmul.f32 %v316_v23, %v307_v29  ;;  %v326_v34 = vmul.f32 %v320_v24, %v309_v30 }
  0xd1   :  { %v385_v50 = vld [vmem:[#allocation2 + $0x68] sm:$0xff]  ;;  %v384_v52 = vld [vmem:[#allocation2 + $0x60] sm:$0xff] }
  0xd2   :  { %327 = vst [vmem:[#allocation2 + $0x70] sm:$0xf] %v323_v31  ;;  %328 = vst [vmem:[#allocation2 + $0x78] sm:$0xf] %v324_v32  ;;  %v332_v36 = vpop.permute.xlu0 %331  ;;  %v334_v37 = vpop.permute.xlu1 %333  ;;  %v503_v51 = vld [vmem:[#allocation2 + $0xf8] sm:$0xff]  ;;  %v502_v56 = vld [vmem:[#allocation2 + $0xf0] sm:$0xff] }
  0xd3   :  { %329 = vst [vmem:[#allocation2 + $0x100] sm:$0xf] %v325_v33  ;;  %330 = vst [vmem:[#allocation2 + $0x108] sm:$0xf] %v326_v34 }
  0xd6   :  { %v336_v40 = vpop.permute.xlu0 %335  ;;  %v338_v41 = vpop.permute.xlu1 %337 }
  0xd7   :  { %v340_v42 = vsel %vm339_vm7, %v332_v36, %v336_v40  ;;  %v342_v43 = vsel %vm339_vm7, %v336_v40, %v332_v36  ;;  %v341_v44 = vsel %vm339_vm7, %v334_v37, %v338_v41  ;;  %v343_v45 = vsel %vm339_vm7, %v338_v41, %v334_v37 }
  0xd8   :  { %v357_v46 = vmul.f32 %v350_v38, %v340_v42  ;;  %v358_v47 = vmul.f32 %v354_v39, %v342_v43  ;;  %v359_v48 = vmul.f32 %v350_v38, %v341_v44  ;;  %v360_v49 = vmul.f32 %v354_v39, %v343_v45 }
  0xd9   :  { %v387_v53 = vld [vmem:[#allocation2 + $0x78] sm:$0xff]  ;;  %v386_v9 = vld [vmem:[#allocation2 + $0x70] sm:$0xff] }
  0xda   :  { %v505_v54 = vld [vmem:[#allocation2 + $0x108] sm:$0xff]  ;;  %361 = vst [vmem:[#allocation2 + $0x80] sm:$0xf] %v357_v46  ;;  %362 = vst [vmem:[#allocation2 + $0x88] sm:$0xf] %v358_v47  ;;  %v643_v10 = vpack.c.bf16 %v387_v53, %v385_v50  ;;  %v645_v55 = vpack.c.bf16 %v386_v9, %v384_v52  ;;  %v504_v57 = vld [vmem:[#allocation2 + $0x100] sm:$0xff] }
  0xdb   :  { %363 = vst [vmem:[#allocation2 + $0x110] sm:$0xf] %v359_v48  ;;  %364 = vst [vmem:[#allocation2 + $0x118] sm:$0xf] %v360_v49  ;;  %v659_v11 = vpack.c.bf16 %v505_v54, %v503_v51  ;;  %v661_v58 = vpack.c.bf16 %v504_v57, %v502_v56 }
  0xdc   :  { %644 = vmatprep.subr.bf16.mxu0 %v643_v10 }
  0xdd   :  { %660 = vmatprep.subr.bf16.mxu1 %v659_v11  ;;  %646 = vmatpush1.bf16.msra.mxu0 %v645_v55 }
  0xde   :  { %662 = vmatpush1.bf16.msra.mxu1 %v661_v58 }
  0xe1   :  { %v389_v60 = vld [vmem:[#allocation2 + $0x88] sm:$0xff]  ;;  %v388_v62 = vld [vmem:[#allocation2 + $0x80] sm:$0xff] }
  0xe2   :  { %v507_v61 = vld [vmem:[#allocation2 + $0x118] sm:$0xff]  ;;  %410 = vmatprep.subr.mxu0 %v389_v60  ;;  %v506_v63 = vld [vmem:[#allocation2 + $0x110] sm:$0xff] }
  0xe3   :  { %524 = vmatprep.subr.mxu1 %v507_v61  ;;  %411 = vmatpush1.msra.mxu0 %v388_v62 }
  0xe4   :  { %525 = vmatpush1.msra.mxu1 %v506_v63  ;;  %629 = vmatmul.mubr.msk.f32.vlgmr.msra.gmra.mrb[0].mxu0 %vm390_vm8, %v365_v59 }
  0xe5   :  { %630 = vmatmul.mubr.msk.f32.vlgmr.msra.gmra.mrb[0].mxu1 %vm390_vm8, %v365_v59 }
  0xe7   :  { %v370_v0 = vpop.permute.xlu0 %369 }
 0x1b7   :  { %v460_v3 = vpop.f32.mrb[0].mxu0 }
 0x1b8   :  { %v574_v4 = vpop.f32.mrb[0].mxu1  ;;  %v461_v5 = vadd.f32 %v460_v3, %v370_v0  ;;  %v462_v7 = vpop.f32.mrb[1].mxu0 }
 0x1b9   :  { %v575_v6 = vadd.f32 %v574_v4, %v370_v0  ;;  %v576_v8 = vpop.f32.mrb[1].mxu1  ;;  %v463_v12 = vadd.f32 %v462_v7, %v370_v0 }
 0x1ba   :  { %v577_v13 = vadd.f32 %v576_v8, %v370_v0  ;;  %v465_v14 = vsub.f32 0.0, %v461_v5 }
 0x1bb   :  { %v579_v15 = vsub.f32 0.0, %v575_v6  ;;  %v466_v16 = vsub.f32 0.0, %v463_v12 }
 0x1bc   :  { %v580_v17 = vsub.f32 0.0, %v577_v13  ;;  %v467_v18 = vmul.f32 1.442695, %v465_v14 }
 0x1bd   :  { %v581_v19 = vmul.f32 1.442695, %v579_v15  ;;  %v469_v20 = vmul.f32 1.442695, %v466_v16 }
 0x1be   :  { %v583_v21 = vmul.f32 1.442695, %v580_v17  ;;  %681 = vpow2.f32 %v467_v18 }
 0x1bf   :  { %683 = vpow2.f32 %v581_v19 }
 0x1c0   :  { %685 = vpow2.f32 %v469_v20 }
 0x1c1   :  { %687 = vpow2.f32 %v583_v21 }
 0x1c8   :  { %v682_v22 = vpop.eup %681 }
 0x1c9   :  { %v684_v23 = vpop.eup %683  ;;  %v471_v24 = vadd.f32 1.0, %v682_v22 }
 0x1ca   :  { %v686_v25 = vpop.eup %685  ;;  %v585_v26 = vadd.f32 1.0, %v684_v23 }
 0x1cb   :  { %v688_v27 = vpop.eup %687  ;;  %689 = vrcp.f32 %v471_v24  ;;  %v472_v28 = vadd.f32 1.0, %v686_v25 }
 0x1cc   :  { %691 = vrcp.f32 %v585_v26  ;;  %v586_v29 = vadd.f32 1.0, %v688_v27 }
 0x1cd   :  { %693 = vrcp.f32 %v472_v28 }
 0x1ce   :  { %695 = vrcp.f32 %v586_v29 }
 0x1d5   :  { %v690_v30 = vpop.eup %689 }
 0x1d6   :  { %v692_v31 = vpop.eup %691  ;;  %v477_v32 = vrot.slane %v690_v30, 4 }
 0x1d7   :  { %v694_v33 = vpop.eup %693  ;;  %v591_v34 = vrot.slane %v692_v31, 4 }
 0x1d8   :  { %v696_v35 = vpop.eup %695  ;;  %v481_v36 = vmul.f32 %v477_v32, %v461_v5  ;;  %v478_v37 = vrot.slane %v694_v33, 4 }
 0x1d9   :  { %v595_v38 = vmul.f32 %v591_v34, %v575_v6  ;;  %v592_v39 = vrot.slane %v696_v35, 4 }
 0x1da   :  { %v482_v40 = vmul.f32 %v478_v37, %v463_v12 }
 0x1db   :  { %v596_v41 = vmul.f32 %v592_v39, %v577_v13 }
 0x1dc   :  { %v485_v42 = vcombine.low %v481_v36, %v482_v40 }
 0x1dd   :  { %v599_v43 = vcombine.low %v595_v38, %v596_v41 }
 0x1de   :  { %v487_v44 = vadd.f32 %v485_v42, %v838_v2 }
 0x1df   :  { %v601_v45 = vadd.f32 %v599_v43, %v836_v1 }
 0x1e0   :  { %488 = vst [vmem:[#allocation8] sm:$0xff] %v487_v44 }
 0x1e1   :  { %603 = vst [vmem:[#allocation8 + $0x8] sm:$0xff] %v601_v45 }
 0x1e2   :  { %752 = shalt.err (!%p749_p6)
}
 0x1e3   :  { %s753_s16 = scalar_lea.hbm %s940_s4, 256 }
 0x1e4   :  { %p754_p7 = scmp.ne.s32.totalorder %s940_s4, %s753_s16  ;;  %p757_p8 = scmp.lt.u32.totalorder %s753_s16, %s940_s4 }
 0x1e6   :  { %p759_p9 = pnand %p757_p8, %p754_p7 }
 0x1e8   :  { %762 = shalt.err (!%p759_p9)
}
 0x1e9   :  { %615 = dma.vmem_to_hbm [thread:$0]  %s610_s13, 256, %s940_s4, [#allocation5], %s770_s25, %s770_s25, %s771_s26  }
 0x1ea   :  { %767 = dma.done.wait [#allocation5], 256  }
 0x1eb   :  { %768 = vsyncadd [#allocation5], 4294967040 }
 0x1ec   :  { %619 = vsyncpa [#allocation4], 1 }
 0x1ed   :  { %620 = vsyncpa [#allocation7], 1 }
 0x1ee   :  { %621 = vsyncpa [#allocation5], 1 }

</bundles_post_ra>
